<compile_context>
chip_gen: v7x
topology: tpu7x:2x2x1
jax: 0.10.0
libtpu: 0.0.40
codegen_flags: <defaults>
</compile_context>

<pallas_src>
import jax
import jax.numpy as jnp
from jax.experimental import pallas as pl
from jax.experimental.pallas import tpu as pltpu


def post_smooth_kernel(x_ref, s_ref, o_ref):
    # Elementwise per-channel smoothing multiply on the VPU.
    # s_ref is (1, d_tile) and broadcasts over the row (sublane) axis.
    o_ref[...] = (x_ref[...] * s_ref[...]).astype(o_ref.dtype)


def _round_up(x, m):
    return (x + m - 1) // m * m


def _choose_tiles(rows, D, itemsize, *, block_budget_bytes=4 << 20, d_tile_cap=2048):
    """Pick (row_tile, d_tile) so each block is ~block_budget_bytes.

    d_tile must be a multiple of 128 that divides D (or D itself when D is
    small / not lane-aligned); row_tile is a multiple of 8.
    """
    if D % 128 == 0 and D > d_tile_cap:
        d_tile = d_tile_cap
        while D % d_tile != 0:   # 128 always divides D here, so this terminates
            d_tile -= 128
        d_tile = max(d_tile, 128)
    else:
        d_tile = D

    row_tile = block_budget_bytes // (d_tile * itemsize)
    row_tile = max(8, (row_tile // 8) * 8)
    # No point making the tile larger than the (8-aligned) row count.
    row_tile = min(row_tile, max(8, _round_up(rows, 8)))
    return row_tile, d_tile


def fast_post_smooth(x, smooth, top_k_indices):
    """x: (B, S, D); smooth: (D,); returns (B, S, D) in x.dtype."""
    del top_k_indices  # TODO(synk): unused in the stubbed reference forward.
    B, S, D = x.shape
    rows = B * S

    x2 = x.reshape(rows, D)
    s2 = smooth.reshape(1, D)

    row_tile, d_tile = _choose_tiles(rows, D, jnp.dtype(x.dtype).itemsize)

    rows_padded = _round_up(rows, row_tile)
    if rows_padded != rows:
        x2 = jnp.pad(x2, ((0, rows_padded - rows), (0, 0)))

    grid = (rows_padded // row_tile, D // d_tile)

    out = pl.pallas_call(
        post_smooth_kernel,
        out_shape=jax.ShapeDtypeStruct((rows_padded, D), x.dtype),
        grid_spec=pl.GridSpec(
            grid=grid,
            in_specs=[
                pl.BlockSpec((row_tile, d_tile), lambda i, j: (i, j)),
                pl.BlockSpec((1, d_tile), lambda i, j: (0, j)),
            ],
            out_specs=pl.BlockSpec((row_tile, d_tile), lambda i, j: (i, j)),
        ),
        compiler_params=pltpu.CompilerParams(
            # Both axes are embarrassingly parallel; lets v7x shard over 2 TCs.
            dimension_semantics=("parallel", "parallel"),
            # ~16 MiB of double-buffered blocks + headroom; fits v5e/v6e/v7x.
            vmem_limit_bytes=32 << 20,
        ),
    )(x2, s2)

    if rows_padded != rows:
        out = out[:rows]
    return out.reshape(B, S, D)


if __name__ == "__main__":
    # Module config (small): hidden_dim=32, top_k=2 -> D = 2*32*2 = 128
    hidden_dim, top_k = 32, 2
    D = 2 * hidden_dim * top_k
    B, S = 2, 8
    dtype = jnp.bfloat16

    # Deterministic parameter init per __init__: ones buffers.
    smooth = jnp.ones((D,), dtype=dtype)
    top_k_indices = jnp.ones((D,), dtype=jnp.int32)

    key = jax.random.PRNGKey(0)
    k_x, k_x2, k_s2 = jax.random.split(key, 3)
    x = jax.random.normal(k_x, (B, S, D), dtype=jnp.float32).astype(dtype)

    y = fast_post_smooth(x, smooth, top_k_indices)
    jax.block_until_ready(y)

    y_ref = (x.astype(jnp.float32) * smooth.astype(jnp.float32)).astype(dtype)
    assert y.shape == (B, S, D) and y.dtype == dtype
    assert jnp.allclose(y.astype(jnp.float32), y_ref.astype(jnp.float32),
                        rtol=2e-2, atol=2e-2)

    # Second check: non-trivial smooth + row count not divisible by the tile
    # (exercises the padding path and the actual multiply).
    B2, S2 = 3, 5
    x2 = jax.random.normal(k_x2, (B2, S2, D), dtype=jnp.float32).astype(dtype)
    smooth2 = (0.5 + jax.random.uniform(k_s2, (D,), dtype=jnp.float32)).astype(dtype)
    y2 = fast_post_smooth(x2, smooth2, top_k_indices)
    jax.block_until_ready(y2)
    y2_ref = (x2.astype(jnp.float32) * smooth2.astype(jnp.float32)).astype(dtype)
    assert y2.shape == (B2, S2, D) and y2.dtype == dtype
    assert jnp.allclose(y2.astype(jnp.float32), y2_ref.astype(jnp.float32),
                        rtol=2e-2, atol=2e-2)

    print("KERNEL_OK")
</pallas_src>

<mosaic_0001>
module attributes {stable_mosaic.version = 11 : i64} {
  func.func @post_smooth_kernel(%arg0: i32, %arg1: i32, %arg2: memref<16x128xbf16, #tpu.memory_space<vmem>>, %arg3: memref<1x128xbf16, #tpu.memory_space<vmem>>, %arg4: memref<16x128xbf16, #tpu.memory_space<vmem>>) attributes {dimension_semantics = [#tpu.dimension_semantics<parallel>, #tpu.dimension_semantics<parallel>], iteration_bounds = array<i64: 1, 1>, scalar_prefetch = 0 : i64, scratch_operands = 0 : i64, tpu.core_type = #tpu.core_type<tc>, window_params = [{transform_indices = @transform_0, window_bounds = array<i64: 16, 128>}, {transform_indices = @transform_1, window_bounds = array<i64: 1, 128>}, {transform_indices = @transform_2, window_bounds = array<i64: 16, 128>}]} {
    %c0 = arith.constant 0 : index
    %c0_0 = arith.constant 0 : index
    %0 = vector.load %arg2[%c0, %c0_0] : memref<16x128xbf16, #tpu.memory_space<vmem>>, vector<16x128xbf16>
    %c0_1 = arith.constant 0 : index
    %c0_2 = arith.constant 0 : index
    %1 = vector.load %arg3[%c0_1, %c0_2] : memref<1x128xbf16, #tpu.memory_space<vmem>>, vector<1x128xbf16>
    %2 = vector.broadcast %1 : vector<1x128xbf16> to vector<16x128xbf16>
    %3 = arith.mulf %0, %2 : vector<16x128xbf16>
    %c0_3 = arith.constant 0 : index
    %c0_4 = arith.constant 0 : index
    %4 = vector.load %arg4[%c0_3, %c0_4] : memref<16x128xbf16, #tpu.memory_space<vmem>>, vector<16x128xbf16>
    tpu.vector_store %arg4[%c0_3, %c0_4], %3 {strides = array<i32>} : memref<16x128xbf16, #tpu.memory_space<vmem>>, vector<16x128xbf16>,
    return
  }
  func.func @transform_0(%arg0: i32, %arg1: i32) -> (i32, i32) {
    %c0_i32 = arith.constant 0 : i32
    return %arg0, %arg1 : i32, i32
  }
  func.func @transform_1(%arg0: i32, %arg1: i32) -> (i32, i32) {
    %c0_i32 = arith.constant 0 : i32
    %c0_i32_0 = arith.constant 0 : i32
    return %c0_i32, %arg1 : i32, i32
  }
  func.func @transform_2(%arg0: i32, %arg1: i32) -> (i32, i32) {
    %c0_i32 = arith.constant 0 : i32
    return %arg0, %arg1 : i32, i32
  }
}

</mosaic_0001>

<bundles_post_ra>
// kernel: tpu_custom_call.1
= control target key start
LH: loop header
LB: loop body
LE: loop exit
PB: predicated region body
PF: predicated region fallthrough
CT: control target
= control target key end

     0   :  { %7 = vsyncpa [#allocation3], 0  ;;  %s172_s0 = inlined_call_operand.hbm [shape: bf16[16,128], index: 0, kind: input, shape index: {}]   ;;  %s173_s1 = inlined_call_operand.vmem [shape: bf16[1,128], index: 1, kind: input, shape index: {}]   ;;  %s174_s2 = inlined_call_operand.hbm [shape: bf16[16,128], index: 2, kind: output, shape index: {}]  }
   0x1   :  { %8 = vsyncpa [#allocation4], 0  ;;  %s120_s9 = smov [#allocation2]   ;;  %s72_s13 = scalar_lea.hbm %s172_s0, 128 }
   0x2   :  { %s14_s10 = sshll.u32 %s120_s9, 4  ;;  %p73_p0 = scmp.ne.s32.totalorder %s172_s0, %s72_s13  ;;  %s15_s10 = int_to_ptr.vmem [resolvable:$true] %s14_s10 }
   0x3   :  { %p76_p1 = scmp.lt.u32.totalorder %s72_s13, %s172_s0 }
   0x5   :  { %p78_p2 = pnand %p76_p1, %p73_p0 }
   0x7   :  { %81 = shalt.err (!%p78_p2)
}
   0x8   :  { %s82_s18 = scalar_lea.vmem %s15_s10, 128  ;;  %p87_p4 = scmp.lt.s32.totalorder %s15_s10, %s15_s10 }
   0x9   :  { %p83_p3 = scmp.ne.s32.totalorder %s15_s10, %s82_s18  ;;  %p88_p5 = scmp.lt.s32.totalorder %s82_s18, %s82_s18 }
   0xb   :  { %p89_p6 = por %p88_p5, %p87_p4 }
   0xd   :  { %p90_p7 = pnand %p89_p6, %p83_p3 }
   0xf   :  { %93 = shalt.err (!%p90_p7)
}
  0x10   :  { %s121_s19 = smov 64   ;;  %s122_s20 = smov 4  }
  0x11   :  { %20 = dma.hbm_to_vmem [thread:$0]  %s172_s0, 128, %s15_s10, [#allocation3], %s121_s19, %s121_s19, %s122_s20  }
  0x12   :  { %116 = dma.done.wait [#allocation3], 128  }
  0x13   :  { %117 = vsyncadd [#allocation3], 4294967168  ;;  %v32_v0 = vlaneseq  ;;  %v28_v3 = vld [vmem:[%s173_s1] sm:$0x1]  ;;  %v27_v7 = vld [vmem:[#allocation2 + $0x4] sm:$0xf] }
  0x14   :  { %v30_v4 = vpack.i.b16 %v28_v3, %v28_v3  ;;  %v26_v6 = vld [vmem:[#allocation2] sm:$0xf]  ;;  %s123_s25 = smov [#allocation5]  }
  0x15   :  { %v33_v1 = vshrl.u32 %v32_v0, 7  ;;  %s49_s26 = sshll.u32 %s123_s25, 4  ;;  %s50_s26 = int_to_ptr.vmem [resolvable:$true] %s49_s26 }
  0x16   :  { %s94_s0 = scalar_lea.vmem %s50_s26, 128  ;;  %p99_p9 = scmp.lt.s32.totalorder %s50_s26, %s50_s26 }
  0x17   :  { %v34_v2 = vsub.s32 0, %v33_v1  ;;  %p95_p8 = scmp.ne.s32.totalorder %s50_s26, %s94_s0  ;;  %p100_p10 = scmp.lt.s32.totalorder %s94_s0, %s94_s0 }
  0x19   :  { %v35_v5 = vrot.slane %v30_v4, %v34_v2  ;;  %p101_p11 = por %p100_p10, %p99_p9 }
  0x1b   :  { %v61_v8 = vcombine.low %v35_v5, %v35_v5  ;;  %p102_p12 = pnand %p101_p11, %p95_p8 }
  0x1d   :  { %v40_v9 = vmul.bf16 %v61_v8, %v26_v6  ;;  %v41_v10 = vmul.bf16 %v61_v8, %v27_v7 }
  0x1f   :  { %v67_v11 = vcombine.low %v40_v9, %v41_v10 }
  0x21   :  { %66 = vst [vmem:[#allocation5] sm:$0xff] %v67_v11  }
  0x22   :  { %105 = shalt.err (!%p102_p12)
}
  0x23   :  { %s106_s28 = scalar_lea.hbm %s174_s2, 128 }
  0x24   :  { %p107_p13 = scmp.ne.s32.totalorder %s174_s2, %s106_s28  ;;  %p110_p0 = scmp.lt.u32.totalorder %s106_s28, %s174_s2 }
  0x26   :  { %p112_p1 = pnand %p110_p0, %p107_p13 }
  0x28   :  { %115 = shalt.err (!%p112_p1)
}
  0x29   :  { %55 = dma.vmem_to_hbm [thread:$0]  %s50_s26, 128, %s174_s2, [#allocation4], %s121_s19, %s121_s19, %s122_s20  }
  0x2a   :  { %118 = dma.done.wait [#allocation4], 128  }
  0x2b   :  { %119 = vsyncadd [#allocation4], 4294967168 }
  0x2c   :  { %59 = vsyncpa [#allocation3], 1 }
  0x2d   :  { %60 = vsyncpa [#allocation4], 1 }

</bundles_post_ra>
